<compile_context>
chip_gen: v5e
topology: v5e:2x2
jax: 0.10.0
libtpu: 0.0.40
codegen_flags: <defaults>
</compile_context>

<pallas_src>
import functools

import jax
import jax.numpy as jnp
import numpy as np
from jax.experimental import pallas as pl
from jax.experimental.pallas import tpu as pltpu


def _round_up(x, m):
    return ((x + m - 1) // m) * m


def _channel_loss_kernel(vec_ref, inv_ref, w_ref, out_ref, *, budget, unlimited_lower):
    # vec_ref: (TL, B, Cmax) chunk of channel predictions, zero-padded past each layer's
    #          true channel count and past L along the layer axis.
    # inv_ref: (TL, 1, 1) f32, 1 / n_channels_l (0.0 for padded layers).
    # w_ref  : (2, B) f32: row 0 = 1/B (batch-mean weights), row 1 = sample_weight / B.
    # out_ref: (TL, 2) f32: col 0 = per-layer mean(channel_percent), col 1 = per-layer loss term.
    v = vec_ref[...].astype(jnp.float32)          # cast-on-load; math stays f32 (v5e-safe)
    inv_c = inv_ref[...][..., 0]                  # (TL, 1)
    w = w_ref[...]                                # (2, B), premultiplied in wrapper

    # channel_percent = sum over channels * (1 / n_channels)  -> (TL, B)
    cp = jnp.sum(v, axis=-1) * inv_c

    # per-layer mean(channel_percent): weights already hold 1/B, so this is a multiply + reduce.
    pct = jnp.sum(cp * w[0:1, :], axis=-1, keepdims=True)        # (TL, 1)

    up = jnp.maximum(cp - budget, 0.0)
    pen = up * up
    if not unlimited_lower:
        lo = jnp.maximum(budget - cp, 0.0)
        # Padded layers (inv_c == 0 -> cp == 0) would contribute relu(budget)^2; mask them out.
        pen = pen + (lo * lo) * (inv_c > 0.0).astype(jnp.float32)

    # weighted batch mean of the penalty; weights already hold sample_weight / B.
    terms = jnp.sum(pen * w[1:2, :], axis=-1, keepdims=True)     # (TL, 1)

    # Single merged store per grid step (one output DMA instead of two).
    out_ref[...] = jnp.concatenate([pct, terms], axis=1)         # (TL, 2)


def channel_loss(channel_preds, channel_counts, sample_weight=None, *,
                 budget, unlimited_lower=False, lasso_sum=None,
                 layers_per_step=None, assume_zero_padded=True,
                 vmem_block_budget_bytes=8 * 1024 * 1024):
    """channel_preds: (L, B, Cmax), any float/int dtype.
       Contract: entries at channel index >= channel_counts[l] MUST be zero when
       assume_zero_padded=True (pass assume_zero_padded=False to enforce it here).
       channel_counts: (L,) int real channel counts (must be > 0).
       sample_weight: (B,) f32 (defaults to ones, as in the PyTorch module)."""
    L, B, Cmax = channel_preds.shape

    if not (0.0 < budget < 1.0):
        # PyTorch else-branch: channel_loss = meta['lasso_sum'], channel_percents stays [].
        return lasso_sum, jnp.zeros((0,), jnp.float32)

    if sample_weight is None:
        sample_weight = jnp.ones((B,), jnp.float32)
    # Premultiplied resident weights: row 0 = 1/B (batch mean), row 1 = sample_weight / B.
    inv_batch = 1.0 / float(B)
    w = jnp.stack([jnp.full((B,), inv_batch, jnp.float32),
                   sample_weight.astype(jnp.float32).reshape(B) * inv_batch], axis=0)  # (2, B)

    if not assume_zero_padded:
        # Enforce the zero-padding invariant once in the wrapper (one fused XLA pass).
        col = jnp.arange(Cmax)[None, None, :]
        channel_preds = jnp.where(col < channel_counts[:, None, None], channel_preds,
                                  jnp.zeros((), channel_preds.dtype))

    # Per-layer reciprocal channel counts (guarded against zero counts); 0 marks padded layers.
    cc = channel_counts.astype(jnp.float32)
    inv_c = jnp.where(cc > 0, 1.0 / jnp.maximum(cc, 1.0), 0.0)

    # --- layer chunking ---------------------------------------------------------------------
    # Size blocks by the *padded* VMEM layout (dtype sublane tile x 128 lanes), not raw bytes.
    itemsize = jnp.dtype(channel_preds.dtype).itemsize
    sublane = {4: 8, 2: 16, 1: 32}.get(itemsize, 8)
    bytes_per_layer = _round_up(B, sublane) * _round_up(Cmax, 128) * itemsize

    if layers_per_step is not None:
        TL = max(1, min(int(layers_per_step), L))
    else:
        # Enough chunks to keep each buffered input block under the VMEM budget, and at least
        # 2 chunks (when L permits) so the pipeline overlaps DMA with compute and the
        # "parallel" chunk axis can shard across v7x's 2 TensorCores.
        chunks_for_vmem = pl.cdiv(L * bytes_per_layer, vmem_block_budget_bytes)
        n_target = min(L, max(2, chunks_for_vmem)) if L >= 2 else 1
        TL = pl.cdiv(L, n_target)
    n_chunks = pl.cdiv(L, TL)
    L_pad = n_chunks * TL

    if L_pad != L:
        pad = L_pad - L
        channel_preds = jnp.pad(channel_preds, ((0, pad), (0, 0), (0, 0)))
        inv_c = jnp.pad(inv_c, ((0, pad),))
    inv_c = inv_c.reshape(L_pad, 1, 1)

    # Explicit scoped-VMEM limit: 2x double-buffered input block + slack for tiny residents.
    block_bytes = TL * bytes_per_layer
    vmem_limit = int(max(32 * 1024 * 1024, 2 * block_bytes + 4 * 1024 * 1024))

    kernel = functools.partial(_channel_loss_kernel,
                               budget=float(budget),
                               unlimited_lower=bool(unlimited_lower))

    out = pl.pallas_call(
        kernel,
        out_shape=jax.ShapeDtypeStruct((n_chunks, TL, 2), jnp.float32),
        grid_spec=pltpu.PrefetchScalarGridSpec(
            num_scalar_prefetch=0,
            grid=(n_chunks,),
            in_specs=[
                pl.BlockSpec((TL, B, Cmax), lambda c: (c, 0, 0)),  # chunk of TL layers
                pl.BlockSpec((TL, 1, 1), lambda c: (c, 0, 0)),     # 1/n_channels per layer
                pl.BlockSpec((2, B), lambda c: (0, 0)),            # mean / sample weights (resident)
            ],
            out_specs=pl.BlockSpec((None, TL, 2), lambda c: (c, 0, 0)),
        ),
        compiler_params=pltpu.CompilerParams(
            dimension_semantics=("parallel",),       # no cross-step accumulation
            vmem_limit_bytes=vmem_limit),
    )(channel_preds, inv_c, w)

    channel_percents = out[:, :, 0].reshape(-1)[:L]              # per-layer mean channel percent
    per_layer_terms = out[:, :, 1].reshape(-1)[:L]
    channel_loss_val = (per_layer_terms.sum() / L).reshape(1)    # mirrors torch.zeros(1)-shaped loss
    return channel_loss_val, channel_percents


if __name__ == "__main__":
    key = jax.random.PRNGKey(0)
    k1, k2 = jax.random.split(key)

    L, B, Cmax = 6, 8, 128
    budget = 0.5
    unlimited_lower = False

    # Synthetic per-layer binary channel-gate predictions, different channel counts per layer.
    channel_counts = jnp.array([128, 96, 64, 128, 32, 80], dtype=jnp.int32)
    raw = (jax.random.uniform(k1, (L, B, Cmax)) > 0.4).astype(jnp.bfloat16)  # narrow dtype for DMA
    col = jnp.arange(Cmax)[None, None, :]
    preds = jnp.where(col < channel_counts[:, None, None], raw, jnp.zeros((), jnp.bfloat16))
    sample_weight = jax.random.uniform(k2, (B,), minval=0.5, maxval=1.5).astype(jnp.float32)

    loss, pcts = channel_loss(preds, channel_counts, sample_weight,
                              budget=budget, unlimited_lower=unlimited_lower)
    jax.block_until_ready((loss, pcts))

    # Pure-JAX reference (mirrors the PyTorch forward).
    preds_f32 = preds.astype(jnp.float32)
    ref_loss = jnp.zeros((), jnp.float32)
    ref_pcts = []
    for i in range(L):
        c = int(channel_counts[i])
        cp = preds_f32[i, :, :c].sum(axis=1) / c
        ref_pcts.append(cp.mean())
        ref_loss += (jnp.maximum(cp - budget, 0.0) ** 2 * sample_weight).mean()
        if not unlimited_lower:
            ref_loss += (jnp.maximum(budget - cp, 0.0) ** 2 * sample_weight).mean()
    ref_loss /= L
    ref_pcts = jnp.stack(ref_pcts)

    assert np.allclose(np.asarray(loss)[0], np.asarray(ref_loss), atol=1e-5), (loss, ref_loss)
    assert np.allclose(np.asarray(pcts), np.asarray(ref_pcts), atol=1e-5), (pcts, ref_pcts)
    print("KERNEL_OK")
</pallas_src>

<mosaic_0001>
module attributes {stable_mosaic.version = 11 : i64} {
  func.func @_channel_loss_kernel(%arg0: i32, %arg1: memref<3x8x128xbf16, #tpu.memory_space<vmem>>, %arg2: memref<3x1x1xf32, #tpu.memory_space<vmem>>, %arg3: memref<2x8xf32, #tpu.memory_space<vmem>>, %arg4: memref<1x3x2xf32, #tpu.memory_space<vmem>>) attributes {dimension_semantics = [#tpu.dimension_semantics<parallel>], iteration_bounds = array<i64: 2>, scalar_prefetch = 0 : i64, scratch_operands = 0 : i64, tpu.core_type = #tpu.core_type<tc>, window_params = [{transform_indices = @transform_0, window_bounds = array<i64: 3, 8, 128>}, {transform_indices = @transform_1, window_bounds = array<i64: 3, 1, 1>}, {pipeline_mode = #tpu.pipeline_mode<synchronous>, transform_indices = @transform_2, window_bounds = array<i64: 2, 8>}, {transform_indices = @transform_3, window_bounds = array<i64: 1, 3, 2>}]} {
    %c0 = arith.constant 0 : index
    %c0_0 = arith.constant 0 : index
    %c0_1 = arith.constant 0 : index
    %0 = vector.load %arg1[%c0, %c0_0, %c0_1] : memref<3x8x128xbf16, #tpu.memory_space<vmem>>, vector<3x8x128xbf16>
    %1 = arith.extf %0 : vector<3x8x128xbf16> to vector<3x8x128xf32>
    %c0_2 = arith.constant 0 : index
    %c0_3 = arith.constant 0 : index
    %c0_4 = arith.constant 0 : index
    %2 = vector.load %arg2[%c0_2, %c0_3, %c0_4] : memref<3x1x1xf32, #tpu.memory_space<vmem>>, vector<3x1x1xf32>
    %3 = vector.shape_cast %2 : vector<3x1x1xf32> to vector<3x1xf32>
    %c0_5 = arith.constant 0 : index
    %c0_6 = arith.constant 0 : index
    %4 = vector.load %arg3[%c0_5, %c0_6] : memref<2x8xf32, #tpu.memory_space<vmem>>, vector<2x8xf32>
    %cst = arith.constant dense<0.000000e+00> : vector<3x8xf32>
    %5 = vector.multi_reduction <add>, %1, %cst [2] : vector<3x8x128xf32> to vector<3x8xf32>
    %6 = vector.broadcast %3 : vector<3x1xf32> to vector<3x8xf32>
    %7 = arith.mulf %5, %6 : vector<3x8xf32>
    %8 = vector.extract_strided_slice %4 {offsets = [0, 0], sizes = [1, 8], strides = [1, 1]} : vector<2x8xf32> to vector<1x8xf32>
    %9 = vector.broadcast %8 : vector<1x8xf32> to vector<3x8xf32>
    %10 = arith.mulf %7, %9 : vector<3x8xf32>
    %cst_7 = arith.constant dense<0.000000e+00> : vector<3xf32>
    %11 = vector.multi_reduction <add>, %10, %cst_7 [1] : vector<3x8xf32> to vector<3xf32>
    %12 = vector.shape_cast %11 : vector<3xf32> to vector<3x1xf32>
    %cst_8 = arith.constant 5.000000e-01 : f32
    %13 = vector.broadcast %cst_8 : f32 to vector<3x8xf32>
    %14 = arith.subf %7, %13 : vector<3x8xf32>
    %cst_9 = arith.constant 0.000000e+00 : f32
    %15 = vector.broadcast %cst_9 : f32 to vector<3x8xf32>
    %16 = arith.maximumf %14, %15 : vector<3x8xf32>
    %17 = arith.mulf %16, %16 : vector<3x8xf32>
    %cst_10 = arith.constant 5.000000e-01 : f32
    %18 = vector.broadcast %cst_10 : f32 to vector<3x8xf32>
    %19 = arith.subf %18, %7 : vector<3x8xf32>
    %cst_11 = arith.constant 0.000000e+00 : f32
    %20 = vector.broadcast %cst_11 : f32 to vector<3x8xf32>
    %21 = arith.maximumf %19, %20 : vector<3x8xf32>
    %22 = arith.mulf %21, %21 : vector<3x8xf32>
    %cst_12 = arith.constant 0.000000e+00 : f32
    %23 = vector.broadcast %cst_12 : f32 to vector<3x1xf32>
    %24 = arith.cmpf ogt, %3, %23 : vector<3x1xf32>
    %25 = arith.extui %24 : vector<3x1xi1> to vector<3x1xi32>
    %26 = arith.sitofp %25 : vector<3x1xi32> to vector<3x1xf32>
    %27 = vector.broadcast %26 : vector<3x1xf32> to vector<3x8xf32>
    %28 = arith.mulf %22, %27 : vector<3x8xf32>
    %29 = arith.addf %17, %28 : vector<3x8xf32>
    %30 = vector.extract_strided_slice %4 {offsets = [1, 0], sizes = [1, 8], strides = [1, 1]} : vector<2x8xf32> to vector<1x8xf32>
    %31 = vector.broadcast %30 : vector<1x8xf32> to vector<3x8xf32>
    %32 = arith.mulf %29, %31 : vector<3x8xf32>
    %cst_13 = arith.constant dense<0.000000e+00> : vector<3xf32>
    %33 = vector.multi_reduction <add>, %32, %cst_13 [1] : vector<3x8xf32> to vector<3xf32>
    %34 = vector.shape_cast %33 : vector<3xf32> to vector<3x1xf32>
    %35 = tpu.concatenate %12, %34 in 1 : vector<3x1xf32>, vector<3x1xf32> -> vector<3x2xf32>
    %c0_14 = arith.constant 0 : index
    %c0_15 = arith.constant 0 : index
    %c0_16 = arith.constant 0 : index
    %36 = vector.load %arg4[%c0_14, %c0_15, %c0_16] : memref<1x3x2xf32, #tpu.memory_space<vmem>>, vector<1x3x2xf32>
    %37 = vector.shape_cast %36 : vector<1x3x2xf32> to vector<3x2xf32>
    %38 = vector.shape_cast %35 : vector<3x2xf32> to vector<1x3x2xf32>
    tpu.vector_store %arg4[%c0_14, %c0_15, %c0_16], %38 {strides = array<i32>} : memref<1x3x2xf32, #tpu.memory_space<vmem>>, vector<1x3x2xf32>,
    return
  }
  func.func @transform_0(%arg0: i32) -> (i32, i32, i32) {
    %c0_i32 = arith.constant 0 : i32
    %c0_i32_0 = arith.constant 0 : i32
    %c0_i32_1 = arith.constant 0 : i32
    return %arg0, %c0_i32, %c0_i32_0 : i32, i32, i32
  }
  func.func @transform_1(%arg0: i32) -> (i32, i32, i32) {
    %c0_i32 = arith.constant 0 : i32
    %c0_i32_0 = arith.constant 0 : i32
    %c0_i32_1 = arith.constant 0 : i32
    return %arg0, %c0_i32, %c0_i32_0 : i32, i32, i32
  }
  func.func @transform_2(%arg0: i32) -> (i32, i32) {
    %c0_i32 = arith.constant 0 : i32
    %c0_i32_0 = arith.constant 0 : i32
    %c0_i32_1 = arith.constant 0 : i32
    return %c0_i32, %c0_i32_0 : i32, i32
  }
  func.func @transform_3(%arg0: i32) -> (i32, i32, i32) {
    %c0_i32 = arith.constant 0 : i32
    %c0_i32_0 = arith.constant 0 : i32
    %c0_i32_1 = arith.constant 0 : i32
    return %arg0, %c0_i32, %c0_i32_0 : i32, i32, i32
  }
}

</mosaic_0001>

<bundles_post_ra>
// kernel: tpu_custom_call.1
= control target key start
LH: loop header
LB: loop body
LE: loop exit
PB: predicated region body
PF: predicated region fallthrough
CT: control target
= control target key end

     0   :  { %8 = vsyncpa [#allocation3], 0  ;;  %s786_s0 = inlined_call_operand.hbm [shape: bf16[6,8,128], index: 0, kind: input, shape index: {}]   ;;  %s787_s1 = inlined_call_operand.vmem [shape: f32[6,1,1], index: 1, kind: input, shape index: {}]   ;;  %s788_s2 = inlined_call_operand.vmem [shape: f32[2,8], index: 2, kind: input, shape index: {}]   ;;  %s789_s3 = inlined_call_operand.vmem [shape: f32[2,3,2], index: 3, kind: output, shape index: {}]  }
   0x1   :  { %10 = vsyncpa [#allocation3 + $0x1], 0  ;;  %s682_s12 = smov 0   ;;  %s684_s13 = smov 0  }
   0x2   :  { %s686_s14 = smov 0   ;;  %s688_s15 = smov 0  }
   0x3 LB: > { %s701_s16 = sadd.s32 4294967295, %s656_s15   ;;  %s704_s17 = sadd.s32 1, %s656_s15   ;;  %s656_s15 = sphi %s688_s15, %s795_s15   ;;  %s652_s14 = sphi %s686_s14, %s794_s14   ;;  %s648_s13 = sphi %s684_s13, %s793_s13   ;;  %s644_s12 = sphi %s682_s12, %s792_s12  }
   0x4   : > { %s20_s18 = ssub.s32 %s656_s15, %s704_s17  ;;  %s23_s19 = sadd.s32 1, %s652_s14 }
   0x5   : > { %p21_p0 = scmp.eq.s32.totalorder %s20_s18, 0  ;;  %p30_p1 = scmp.ne.s32.totalorder %s652_s14, %s648_s13 }
   0x6   : > { %p31_p2 = scmp.eq.s32.totalorder %s656_s15, 0  ;;  %p36_p3 = scmp.ne.s32.totalorder %s648_s13, %s644_s12 }
   0x7   : > { %s714_s20 = scalar_select %p21_p0, %s652_s14, %s23_s19  }
   0x8   : > { %p32_p4 = por %p31_p2, %p30_p1  ;;  %p37_p5 = scmp.eq.s32.totalorder %s701_s16, 0 }
   0x9   : > { %p541_p6 = scmp.lt.s32.totalorder %s656_s15, 2  ;;  %s136_s22 = sand.u32 1, %s652_s14  }
   0xa   : > { %p718_p7 = por %p37_p5, %p36_p3  ;;  %s533_s23 = smul.u32 12, %s136_s22 }
   0xb   : > { %s528_s24 = smul.u32 12, %s656_s15  ;;  %p724_p8 = pnand %p541_p6, %p32_p4 }
   0xc   : > { %s140_s29 = scalar_lea.vmem [#allocation2], %s533_s23  ;;  %p518_p9 = scmp.ge.s32.totalorder %s656_s15, 1 }
   0xd   : > { %s145_s28 = scalar_lea.hbm %s786_s0, %s528_s24  ;;  %s148_s30 = sshll.u32 %s140_s29, 4  ;;  %s149_s30 = int_to_ptr.vmem [resolvable:$true] %s148_s30 }
   0xe   : > { %s146_s4 = sshll.u32 %s145_s28, 4  ;;  %s137_s5 = scalar_lea.sflag [#allocation3], %s136_s22  ;;  %s147_s4 = int_to_ptr.hbm [resolvable:$true] %s146_s4 }
   0xf   : > { %s592_s6 = sshra.s32 %s147_s4, 4  ;;  %p596_p11 = pneg %p724_p8  ;;  %s593_s6 = int_to_ptr.hbm [resolvable:$true] %s592_s6 }
  0x10   : > { %s594_s7 = scalar_lea.hbm %s593_s6, 12  ;;  %s599_s10 = scalar_lea.hbm %s786_s0, 24 }
  0x11   : > { %p595_p10 = scmp.ne.s32.totalorder %s593_s6, %s594_s7  ;;  %p600_p0 = scmp.lt.s32.totalorder %s593_s6, %s786_s0 }
  0x12   : > { %p601_p1 = scmp.lt.s32.totalorder %s599_s10, %s594_s7 }
  0x13   : > { %p597_p12 = pnand %p596_p11, %p595_p10 }
  0x14   : > { %p602_p2 = por %p601_p1, %p600_p0 }
  0x15   : > { %p598_p13 = pneg %p597_p12 }
  0x17   : > { %p603_p3 = pnand %p602_p2, %p598_p13 }
  0x19   : > { %606 = shalt.err (!%p603_p3)
}
  0x1a   : > { %s658_s18 = smov 64   ;;  %s659_s19 = smov 4  }
  0x1b   : > { %540 = dma.hbm_to_vmem [thread:$0]  (!%p724_p8), %s147_s4, 192, %s149_s30, %s137_s5, %s658_s18, %s658_s18, %s659_s19  }
  0x1c   : > { %p164_p4 = scmp.lt.s32.totalorder %s656_s15, 3 }
  0x1e   : > { %p165_p5 = pnand %p518_p9, %p164_p4 }
  0x1f   : > { %s170_s22 = sand.u32 (!%p165_p5), 1, %s648_s13  }
  0x20   : > { %168 = sbr.rel (%p165_p5) target bundleno = 560 (0x230), region = 32  ;;  %s171_s24 = scalar_lea.sflag (!%p165_p5), [#allocation3], %s170_s22 }
  0x21   : > { %s746_s23 = smul.u32 (!%p165_p5), 12, %s170_s22 }
  0x23   : > { %s174_s26 = scalar_lea.vmem (!%p165_p5), [#allocation2], %s746_s23 }
  0x25   : > { %639 = dma.done.wait (%p718_p7), %s171_s24, 192  }
  0x26   : > { %641 = vsyncadd (%p718_p7), %s171_s24, 4294967104  ;;  %s202_s25 = smul.u32 3, %s701_s16  ;;  %v660_v0 = vmov 0   ;;  %v661_v4 = vmov 0.0   ;;  %v530_v9 = vld [vmem:[%s174_s26] sm:$0xff]   ;;  %v255_v14 = vlaneseq  ;;  %vm312_vm3 = vcmask 1042434  }
  0x27   : > { %579 = vset.pattern.permute.xlu1 %v660_v0  ;;  %578 = vset.pattern.permute.xlu0 %v660_v0  ;;  %v531_v10 = vunpack.c.l.bf16 %v530_v9  ;;  %v213_v11 = vld [vmem:[%s174_s26 + $0x8] sm:$0xf]  ;;  %v532_v13 = vunpack.c.h.bf16 %v530_v9  ;;  %v220_v36 = vld [vmem:[%s788_s2] sm:$0x3]  ;;  %vm310_vm4 = vcmask 1041409   ;;  %vm315_vm5 = vcmask 59392  }
  0x28   : > { %p203_p6 = scmp.lt.s32.totalorder %s202_s25, 5  ;;  %585 = vset.pattern.permute.xlu2 %v660_v0  ;;  %v216_v12 = vunpack.c.l.bf16 %v213_v11  ;;  %v256_v15 = vshrl.u32 %v255_v14, 7  ;;  %v403_v37 = vperm.slane %v220_v36, 1  ;;  %v281_v39 = vperm.slane %v220_v36, 0  ;;  %p207_p7 = scmp.lt.s32.totalorder %s701_s16, 1 }
  0x29   : > { %vm436_vm6 = vcmask 7168   ;;  %vm438_vm7 = vcmask 10240  }
  0x2a   : > { %s797_s25 = smov (!%p203_p6, %s202_s25), 5  ;;  %s799_s16 = smov (!%p207_p7, %s701_s16), 1 }
  0x2b   : > { %s205_s28 = scalar_lea.vmem %s787_s1, %s797_s25  ;;  %s519_s30 = sshll.u32 %s799_s16, 2 }
  0x2c   : > { %v219_v1 = vld [vmem:[%s205_s28 + $0x2] sm:$0x1]  ;;  %v217_v2 = vld [vmem:[%s205_s28] sm:$0x1]  ;;  %v218_v3 = vld [vmem:[%s205_s28 + $0x1] sm:$0x1]  ;;  %s210_s6 = scalar_lea.vmem %s789_s3, %s519_s30 }
  0x2d   : > { %241 = vperm.xlu1 %579, %v219_v1   ;;  %229 = vperm.xlu0 %578, %v217_v2   ;;  %vm337_vm0 = vcmp.gt.f32.partialorder %v217_v2, 0.0  ;;  %vm338_vm1 = vcmp.gt.f32.partialorder %v218_v3, 0.0  ;;  %vm339_vm2 = vcmp.gt.f32.partialorder %v219_v1, 0.0 }
  0x2e   : > { %v523_v5 = vsel %vm337_vm0, 1.0, %v661_v4  ;;  %v524_v6 = vsel %vm338_vm1, 1.0, %v661_v4  ;;  %v525_v7 = vsel %vm339_vm2, 1.0, %v661_v4 }
  0x2f   : > { %360 = vperm.xlu2 %585, %v525_v7   ;;  %v580_v8 = vpack.i.bf16 %v524_v6, %v523_v5 }
  0x35   : > { %235 = vperm.xlu0 %578, %v218_v3   ;;  %581 = vperm.xlu1 %579, %v580_v8  }
  0x37   : > { %586 = vset.pattern.permute.xlu2 %v256_v15 }
  0x3d   : > { %587 = vset.pattern.permute.xlu0 %v256_v15  ;;  %588 = vset.pattern.permute.xlu1 %v256_v15 }
  0x58   : > { %221 = vadd.xlane.f32.xlu2 %v531_v10 }
  0x5f   : > { %225 = vadd.xlane.f32.xlu1 %v216_v12  ;;  %223 = vadd.xlane.f32.xlu0 %v532_v13 }
  0x89   : > { %v361_v25 = vpop.permute.xlu2 %360 }
  0x8a   : > { %v363_v27 = vperm.slane %v361_v25, 0 }
  0x9f   : > { %v242_v16 = vpop.permute.xlu1 %241  ;;  %v230_v17 = vpop.permute.xlu0 %229 }
  0xa0   : > { %v244_v18 = vperm.slane %v242_v16, 0  ;;  %v232_v19 = vperm.slane %v230_v17, 0 }
  0xa2   : > { %252 = vst [vmem:[#allocation1 + $0x2] ss:$9 sm:$0xff] %v244_v18 }
  0xa3   : > { %248 = vst [vmem:[#allocation1] ss:$9 sm:$0xff] %v232_v19 }
  0xa7   : > { %v236_v20 = vpop.permute.xlu0 %235  ;;  %v582_v22 = vpop.permute.xlu1 %581 }
  0xa8   : > { %v238_v21 = vperm.slane %v236_v20, 0  ;;  %v584_v23 = vunpack.i.h.bf16 %v582_v22  ;;  %v583_v24 = vunpack.i.l.bf16 %v582_v22 }
  0xaa   : > { %250 = vst [vmem:[#allocation1 + $0x1] ss:$9 sm:$0xff] %v238_v21  ;;  %v357_v26 = vperm.slane %v584_v23, 0  ;;  %v351_v29 = vperm.slane %v583_v24, 0  ;;  %v306_v23 = vand.u32 127, %v255_v14 }
  0xb1   : > { %v253_v28 = vld [vmem:[#allocation1] sm:$0xff] }
  0xb2   : > { %369 = vst [vmem:[#allocation1 + $0x1] ss:$9 sm:$0xff] %v357_v26  ;;  %v268_v30 = vperm.slane %v253_v28, 2  ;;  %v261_v31 = vperm.slane %v253_v28, 1  ;;  %v254_v32 = vperm.slane %v253_v28, 0 }
  0xb3   : > { %367 = vst [vmem:[#allocation1] ss:$9 sm:$0xff] %v351_v29 }
  0xb4   : > { %371 = vst [vmem:[#allocation1 + $0x2] ss:$9 sm:$0xff] %v363_v27  ;;  %273 = vperm.xlu1 %588, %v268_v30   ;;  %266 = vperm.xlu0 %587, %v261_v31  }
  0xb5   : > { %259 = vperm.xlu2 %586, %v254_v32  }
  0xbb   : > { %v372_v33 = vld [vmem:[#allocation1] sm:$0xff] }
  0xbc   : > { %v387_v34 = vperm.slane %v372_v33, 2  ;;  %v373_v35 = vperm.slane %v372_v33, 0  ;;  %590 = vset.pattern.permute.xlu0 %v660_v0  ;;  %v380_v38 = vperm.slane %v372_v33, 1 }
  0xbe   : > { %392 = vperm.xlu1 %588, %v387_v34   ;;  %378 = vperm.xlu2 %586, %v373_v35  }
  0xc6   : > { %409 = vperm.xlu1 %588, %v403_v37   ;;  %385 = vperm.xlu2 %586, %v380_v38  }
  0xcb   : > { %v222_v40 = vpop.xlane.xlu2 %221 }
  0xce   : > { %287 = vperm.xlu2 %586, %v281_v39   ;;  %591 = vset.pattern.permute.xlu1 %v660_v0 }
  0xd2   : > { %v224_v43 = vpop.xlane.xlu0 %223  ;;  %v226_v44 = vpop.xlane.xlu1 %225 }
  0xd6   : > { %589 = vset.pattern.permute.xlu2 %v660_v0 }
 0x10f   : > { %v260_v41 = vpop.permute.xlu2 %259 }
 0x110   : > { %v278_v46 = vmul.f32 %v260_v41, %v222_v40 }
 0x112   : > { %v328_v49 = vsub.f32 0.5, %v278_v46  ;;  %v520_v58 = vadd.f32 -0.5, %v278_v46 }
 0x114   : > { %v331_v55 = vmax.f32 %v328_v49, 0.0  ;;  %v322_v0 = vmax.f32 %v520_v58, 0.0 }
 0x116   : > { %v334_v60 = vmul.f32 %v331_v55, %v331_v55  ;;  %v325_v5 = vmul.f32 %v322_v0, %v322_v0 }
 0x118   : > { %v379_v42 = vpop.permute.xlu2 %378 }
 0x119   : > { %v397_v2 = vmul.f32 %v379_v42, %v334_v60 }
 0x11b   : > { %v400_v8 = vadd.f32 %v397_v2, %v325_v5 }
 0x120   : > { %v386_v45 = vpop.permute.xlu2 %385 }
 0x126   : > { %v274_v47 = vpop.permute.xlu1 %273  ;;  %v267_v48 = vpop.permute.xlu0 %266 }
 0x127   : > { %v279_v50 = vmul.f32 %v267_v48, %v224_v43  ;;  %v280_v56 = vmul.f32 %v274_v47, %v226_v44 }
 0x128   : > { %v288_v51 = vpop.permute.xlu2 %287 }
 0x129   : > { %v329_v52 = vsub.f32 0.5, %v279_v50  ;;  %v290_v53 = vmul.f32 %v288_v51, %v278_v46  ;;  %v291_v54 = vmul.f32 %v288_v51, %v279_v50  ;;  %v521_v59 = vadd.f32 -0.5, %v279_v50 }
 0x12a   : > { %v330_v62 = vsub.f32 0.5, %v280_v56  ;;  %v522_v6 = vadd.f32 -0.5, %v280_v56  ;;  %v292_v19 = vmul.f32 %v288_v51, %v280_v56 }
 0x12b   : > { %v332_v57 = vmax.f32 %v329_v52, 0.0  ;;  %297 = vperm.xlu2 %589, %v290_v53   ;;  %300 = vperm.xlu0 %590, %v291_v54   ;;  %v323_v1 = vmax.f32 %v521_v59, 0.0 }
 0x12c   : > { %v333_v3 = vmax.f32 %v330_v62, 0.0  ;;  %v324_v12 = vmax.f32 %v522_v6, 0.0 }
 0x12d   : > { %v335_v61 = vmul.f32 %v332_v57, %v332_v57  ;;  %v326_v7 = vmul.f32 %v323_v1, %v323_v1 }
 0x12e   : > { %v336_v9 = vmul.f32 %v333_v3, %v333_v3  ;;  %v327_v17 = vmul.f32 %v324_v12, %v324_v12 }
 0x12f   : > { %v398_v4 = vmul.f32 %v386_v45, %v335_v61 }
 0x130   : > { %v393_v63 = vpop.permute.xlu1 %392 }
 0x131   : > { %v401_v10 = vadd.f32 %v398_v4, %v326_v7  ;;  %v399_v16 = vmul.f32 %v393_v63, %v336_v9 }
 0x133   : > { %v402_v18 = vadd.f32 %v399_v16, %v327_v17 }
 0x138   : > { %v410_v11 = vpop.permute.xlu1 %409 }
 0x139   : > { %v412_v13 = vmul.f32 %v410_v11, %v400_v8  ;;  %v413_v15 = vmul.f32 %v410_v11, %v401_v10  ;;  %v414_v20 = vmul.f32 %v410_v11, %v402_v18 }
 0x13b   : > { %419 = vperm.xlu1 %591, %v412_v13   ;;  %422 = vperm.xlu2 %589, %v413_v15  }
 0x143   : > { %303 = vperm.xlu1 %591, %v292_v19   ;;  %425 = vperm.xlu2 %589, %v414_v20  }
 0x185   : > { %v298_v21 = vpop.permute.xlu2 %297 }
 0x186   : > { %v307_v34 = vperm.slane %v298_v21, %v306_v23 }
 0x195   : > { %v423_v22 = vpop.permute.xlu2 %422 }
 0x196   : > { %v428_v26 = vperm.slane %v423_v22, %v306_v23 }
 0x19d   : > { %v426_v24 = vpop.permute.xlu2 %425  ;;  %v301_v29 = vpop.permute.xlu0 %300 }
 0x19e   : > { %v429_v28 = vperm.slane %v426_v24, %v306_v23  ;;  %v308_v33 = vperm.slane %v301_v29, %v306_v23 }
 0x1a0   : > { %v311_v14 = vsel %vm310_vm4, %v308_v33, %v307_v34 }
 0x1ad   : > { %v420_v25 = vpop.permute.xlu1 %419 }
 0x1ae   : > { %v427_v27 = vperm.slane %v420_v25, %v306_v23 }
 0x1b0   : > { %v430_v30 = vsel %vm310_vm4, %v428_v26, %v427_v27 }
 0x1b1   : > { %v431_v31 = vsel %vm312_vm3, %v429_v28, %v430_v30 }
 0x1b2   : > { %v433_v32 = vsel %vm315_vm5, %v431_v31, 0.0 }
 0x1b3   : > { %434 = vadd.xlane.f32.xlu1 %v433_v32 }
 0x1b5   : > { %v304_v35 = vpop.permute.xlu1 %303 }
 0x1b6   : > { %v309_v36 = vperm.slane %v304_v35, %v306_v23 }
 0x1b8   : > { %v313_v37 = vsel %vm312_vm3, %v309_v36, %v311_v14 }
 0x1b9   : > { %v316_v38 = vsel %vm315_vm5, %v313_v37, 0.0 }
 0x1ba   : > { %317 = vadd.xlane.f32.xlu0 %v316_v38 }
 0x226   : > { %v435_v39 = vpop.xlane.xlu1 %434 }
 0x22d   : > { %v318_v40 = vpop.xlane.xlu0 %317 }
 0x22e   : > { %v437_v41 = vsel %vm436_vm6, %v318_v40, %v435_v39 }
 0x22f   : > { %439 = vst.msk [vmem:[%s210_s6] sm:$0x7] %vm438_vm7, %v437_v41 }
 0x230 PF: > { %p13_p8 = scmp.ge.s32.totalorder %s704_s17, 4   ;;  %s792_s12 = smov %s648_s13 }
 0x231   : > { %s793_s13 = smov %s652_s14  ;;  %s794_s14 = smov %s714_s20 }
 0x232   : > { %s795_s15 = smov %s704_s17  ;;  %15 = sbr.rel (!%p13_p8) target bundleno = 3 (0x3), region = 79 }
 0x237   :  { %459 = vsyncpa [#allocation3], 1 }
 0x238   :  { %461 = vsyncpa [#allocation3 + $0x1], 1 }

</bundles_post_ra>
